<compile_context>
chip_gen: v7x
topology: tpu7x:2x2x1
jax: 0.10.0
libtpu: 0.0.40
codegen_flags: <defaults>
</compile_context>

<pallas_src>
import functools

import jax
import jax.numpy as jnp
from jax.experimental import pallas as pl
from jax.experimental.pallas import tpu as pltpu


def _round_up(v, m):
    return ((v + m - 1) // m) * m


def _resnet_dense_kernel(hp, x_ref, w01_ref, b01_ref, w2_ref, b2_ref, gamma_ref,
                         out_ref):
    """hp: padded hidden size (static). w01 = [wr | w1] fused along N."""
    x = x_ref[...]

    # Fused residual + hidden-0 matmul: one (tile_m, Kp) @ (Kp, 2*Hp) dot.
    rh = jnp.dot(x, w01_ref[...], preferred_element_type=jnp.float32) + b01_ref[...]
    residual = rh[:, :hp]          # Linear_r(x)
    h = rh[:, hp:]                 # Linear_1(x)

    # SiLU (Dropout(p=0.0) == identity)
    h = h * jax.nn.sigmoid(h)

    # Hidden layer 1: Linear + SiLU (cast LHS to the weight compute dtype).
    h = jnp.dot(h.astype(w2_ref.dtype), w2_ref[...],
                preferred_element_type=jnp.float32) + b2_ref[...]
    h = h * jax.nn.sigmoid(h)

    # LayerScale (per-channel gamma) + residual add.
    out_ref[...] = (residual + gamma_ref[...] * h).astype(out_ref.dtype)


def resnet_dense_pallas(x2d, wr, br, w1, b1, w2, b2, gamma, *,
                        tile_m=256, compute_dtype=None):
    """x2d: (M, input_size); weights are (in, out); biases/gamma are (1, hidden).

    compute_dtype: dtype fed to the MXU for x / weights (e.g. jnp.bfloat16 to
    double MXU throughput). Accumulation and the epilogue stay in float32.
    """
    M, K = x2d.shape
    H = wr.shape[1]
    out_dtype = x2d.dtype
    cdt = jnp.dtype(compute_dtype) if compute_dtype is not None else jnp.dtype(x2d.dtype)

    # Lane-dense padding: K, H -> multiples of 128; M -> multiple of tile_m.
    Kp = _round_up(K, 128)
    Hp = _round_up(H, 128)
    tile_m = _round_up(max(8, min(tile_m, _round_up(M, 8))), 8)
    Mp = _round_up(M, tile_m)

    xp = jnp.pad(x2d, ((0, Mp - M), (0, Kp - K))).astype(cdt)

    # Fuse residual + hidden-0 weights along the N axis: [wr | w1] -> (Kp, 2*Hp).
    wrp = jnp.pad(wr, ((0, Kp - K), (0, Hp - H)))
    w1p = jnp.pad(w1, ((0, Kp - K), (0, Hp - H)))
    w01 = jnp.concatenate([wrp, w1p], axis=1).astype(cdt)          # (Kp, 2*Hp)
    b01 = jnp.concatenate(
        [jnp.pad(br, ((0, 0), (0, Hp - H))),
         jnp.pad(b1, ((0, 0), (0, Hp - H)))], axis=1).astype(jnp.float32)  # (1, 2*Hp)

    w2p = jnp.pad(w2, ((0, Hp - H), (0, Hp - H))).astype(cdt)       # (Hp, Hp)
    b2p = jnp.pad(b2, ((0, 0), (0, Hp - H))).astype(jnp.float32)    # (1, Hp)
    gp = jnp.pad(gamma, ((0, 0), (0, Hp - H))).astype(jnp.float32)  # (1, Hp)

    # VMEM budget: weights + biases (resident) + double-buffered x / out tiles
    # + f32 intermediates headroom. Clamp to 64 MiB (v7x physical VMEM).
    w_itemsize = cdt.itemsize
    weights_bytes = (Kp * 2 * Hp + Hp * Hp) * w_itemsize
    bias_bytes = (2 * Hp + Hp + Hp) * 4
    act_bytes = tile_m * Kp * w_itemsize + tile_m * Hp * jnp.dtype(out_dtype).itemsize
    est = 2 * (weights_bytes + bias_bytes + act_bytes) + 3 * tile_m * Hp * 4
    vmem_limit = int(min(max(est + (8 << 20), 32 << 20), 64 << 20))

    grid = (Mp // tile_m,)
    full = lambda i: (0, 0)

    out_p = pl.pallas_call(
        functools.partial(_resnet_dense_kernel, Hp),
        out_shape=jax.ShapeDtypeStruct((Mp, Hp), out_dtype),
        grid_spec=pltpu.PrefetchScalarGridSpec(
            num_scalar_prefetch=0,
            grid=grid,
            in_specs=[
                pl.BlockSpec((tile_m, Kp), lambda i: (i, 0)),   # x tile
                pl.BlockSpec((Kp, 2 * Hp), full),               # fused [wr | w1]
                pl.BlockSpec((1, 2 * Hp), full),                # fused [br | b1]
                pl.BlockSpec((Hp, Hp), full),                   # hidden layer 1 weight
                pl.BlockSpec((1, Hp), full),                    # hidden layer 1 bias
                pl.BlockSpec((1, Hp), full),                    # layer-scale gamma
            ],
            out_specs=pl.BlockSpec((tile_m, Hp), lambda i: (i, 0)),
        ),
        compiler_params=pltpu.CompilerParams(
            dimension_semantics=("parallel",),
            vmem_limit_bytes=vmem_limit,
        ),
    )(xp, w01, b01, w2p, b2p, gp)

    # Strip the M / H padding.
    return out_p[:M, :H]


def resnet_dense_ref(x2d, wr, br, w1, b1, w2, b2, gamma):
    """Pure-JAX reference for correctness checking."""
    residual = x2d @ wr + br
    h = x2d @ w1 + b1
    h = h * jax.nn.sigmoid(h)
    h = h @ w2 + b2
    h = h * jax.nn.sigmoid(h)
    return residual + gamma * h


if __name__ == "__main__":
    # Small shapes consistent with the module.
    batch, seq = 2, 8
    input_size, hidden_size = 32, 32
    layer_scale_init = 1.0
    dtype = jnp.float32

    key = jax.random.PRNGKey(0)
    kx, kwr, kbr, kw1, kb1, kw2, kb2 = jax.random.split(key, 7)

    # Deterministic parameter init (synthetic; shapes from __init__).
    x = jax.random.normal(kx, (batch, seq, input_size), dtype)
    wr = jax.random.normal(kwr, (input_size, hidden_size), dtype) * 0.1
    br = jax.random.normal(kbr, (1, hidden_size), dtype) * 0.1
    w1 = jax.random.normal(kw1, (input_size, hidden_size), dtype) * 0.1
    b1 = jax.random.normal(kb1, (1, hidden_size), dtype) * 0.1
    w2 = jax.random.normal(kw2, (hidden_size, hidden_size), dtype) * 0.1
    b2 = jax.random.normal(kb2, (1, hidden_size), dtype) * 0.1
    gamma = jnp.full((1, hidden_size), layer_scale_init, dtype)  # LayerScale init

    # Flatten leading dims -> (M, input_size) for the kernel, reshape back after.
    x2d = x.reshape(batch * seq, input_size)

    out2d = resnet_dense_pallas(x2d, wr, br, w1, b1, w2, b2, gamma)
    out = out2d.reshape(batch, seq, hidden_size)
    jax.block_until_ready(out)

    ref = resnet_dense_ref(x2d, wr, br, w1, b1, w2, b2, gamma).reshape(
        batch, seq, hidden_size)
    assert jnp.allclose(out, ref, atol=1e-5, rtol=1e-5), "mismatch vs JAX reference"

    # Optional bf16-compute path (f32 accumulation); looser tolerance.
    out_bf16 = resnet_dense_pallas(x2d, wr, br, w1, b1, w2, b2, gamma,
                                   compute_dtype=jnp.bfloat16)
    jax.block_until_ready(out_bf16)
    assert jnp.allclose(out_bf16.reshape(batch, seq, hidden_size), ref,
                        atol=5e-2, rtol=5e-2), "bf16 path mismatch vs JAX reference"

    print("KERNEL_OK")
</pallas_src>

<mosaic_0001>
module attributes {stable_mosaic.version = 11 : i64} {
  func.func @_resnet_dense_kernel(%arg0: i32, %arg1: memref<16x128xf32, #tpu.memory_space<vmem>>, %arg2: memref<128x256xf32, #tpu.memory_space<vmem>>, %arg3: memref<1x256xf32, #tpu.memory_space<vmem>>, %arg4: memref<128x128xf32, #tpu.memory_space<vmem>>, %arg5: memref<1x128xf32, #tpu.memory_space<vmem>>, %arg6: memref<1x128xf32, #tpu.memory_space<vmem>>, %arg7: memref<16x128xf32, #tpu.memory_space<vmem>>) attributes {dimension_semantics = [#tpu.dimension_semantics<parallel>], iteration_bounds = array<i64: 1>, scalar_prefetch = 0 : i64, scratch_operands = 0 : i64, tpu.core_type = #tpu.core_type<tc>, window_params = [{transform_indices = @transform_0, window_bounds = array<i64: 16, 128>}, {pipeline_mode = #tpu.pipeline_mode<synchronous>, transform_indices = @transform_1, window_bounds = array<i64: 128, 256>}, {pipeline_mode = #tpu.pipeline_mode<synchronous>, transform_indices = @transform_2, window_bounds = array<i64: 1, 256>}, {pipeline_mode = #tpu.pipeline_mode<synchronous>, transform_indices = @transform_3, window_bounds = array<i64: 128, 128>}, {pipeline_mode = #tpu.pipeline_mode<synchronous>, transform_indices = @transform_4, window_bounds = array<i64: 1, 128>}, {pipeline_mode = #tpu.pipeline_mode<synchronous>, transform_indices = @transform_5, window_bounds = array<i64: 1, 128>}, {transform_indices = @transform_6, window_bounds = array<i64: 16, 128>}]} {
    %c0 = arith.constant 0 : index
    %c0_0 = arith.constant 0 : index
    %0 = vector.load %arg1[%c0, %c0_0] : memref<16x128xf32, #tpu.memory_space<vmem>>, vector<16x128xf32>
    %c0_1 = arith.constant 0 : index
    %c0_2 = arith.constant 0 : index
    %1 = vector.load %arg2[%c0_1, %c0_2] : memref<128x256xf32, #tpu.memory_space<vmem>>, vector<128x256xf32>
    %cst = arith.constant dense<0.000000e+00> : vector<16x256xf32>
    %2 = tpu.matmul %0, %1, %cst {dimension_numbers = #tpu.dot_dimension_numbers<[1], [0], [0], [1], [0, 0, 1, 1], [], []>} : vector<16x128xf32>, vector<128x256xf32>, vector<16x256xf32> -> vector<16x256xf32>
    %c0_3 = arith.constant 0 : index
    %c0_4 = arith.constant 0 : index
    %3 = vector.load %arg3[%c0_3, %c0_4] : memref<1x256xf32, #tpu.memory_space<vmem>>, vector<1x256xf32>
    %4 = vector.broadcast %3 : vector<1x256xf32> to vector<16x256xf32>
    %5 = arith.addf %2, %4 : vector<16x256xf32>
    %6 = vector.extract_strided_slice %5 {offsets = [0, 0], sizes = [16, 128], strides = [1, 1]} : vector<16x256xf32> to vector<16x128xf32>
    %7 = vector.extract_strided_slice %5 {offsets = [0, 128], sizes = [16, 128], strides = [1, 1]} : vector<16x256xf32> to vector<16x128xf32>
    %8 = arith.negf %7 : vector<16x128xf32>
    %9 = math.exp %8 : vector<16x128xf32>
    %cst_5 = arith.constant 1.000000e+00 : f32
    %10 = vector.broadcast %cst_5 : f32 to vector<16x128xf32>
    %11 = arith.addf %10, %9 : vector<16x128xf32>
    %12 = arith.divf %10, %11 : vector<16x128xf32>
    %13 = arith.mulf %7, %12 : vector<16x128xf32>
    %c0_6 = arith.constant 0 : index
    %c0_7 = arith.constant 0 : index
    %14 = vector.load %arg4[%c0_6, %c0_7] : memref<128x128xf32, #tpu.memory_space<vmem>>, vector<128x128xf32>
    %cst_8 = arith.constant dense<0.000000e+00> : vector<16x128xf32>
    %15 = tpu.matmul %13, %14, %cst_8 {dimension_numbers = #tpu.dot_dimension_numbers<[1], [0], [0], [1], [0, 0, 1, 1], [], []>} : vector<16x128xf32>, vector<128x128xf32>, vector<16x128xf32> -> vector<16x128xf32>
    %c0_9 = arith.constant 0 : index
    %c0_10 = arith.constant 0 : index
    %16 = vector.load %arg5[%c0_9, %c0_10] : memref<1x128xf32, #tpu.memory_space<vmem>>, vector<1x128xf32>
    %17 = vector.broadcast %16 : vector<1x128xf32> to vector<16x128xf32>
    %18 = arith.addf %15, %17 : vector<16x128xf32>
    %19 = arith.negf %18 : vector<16x128xf32>
    %20 = math.exp %19 : vector<16x128xf32>
    %cst_11 = arith.constant 1.000000e+00 : f32
    %21 = vector.broadcast %cst_11 : f32 to vector<16x128xf32>
    %22 = arith.addf %21, %20 : vector<16x128xf32>
    %23 = arith.divf %21, %22 : vector<16x128xf32>
    %24 = arith.mulf %18, %23 : vector<16x128xf32>
    %c0_12 = arith.constant 0 : index
    %c0_13 = arith.constant 0 : index
    %25 = vector.load %arg6[%c0_12, %c0_13] : memref<1x128xf32, #tpu.memory_space<vmem>>, vector<1x128xf32>
    %26 = vector.broadcast %25 : vector<1x128xf32> to vector<16x128xf32>
    %27 = arith.mulf %26, %24 : vector<16x128xf32>
    %28 = arith.addf %6, %27 : vector<16x128xf32>
    %c0_14 = arith.constant 0 : index
    %c0_15 = arith.constant 0 : index
    %29 = vector.load %arg7[%c0_14, %c0_15] : memref<16x128xf32, #tpu.memory_space<vmem>>, vector<16x128xf32>
    tpu.vector_store %arg7[%c0_14, %c0_15], %28 {strides = array<i32>} : memref<16x128xf32, #tpu.memory_space<vmem>>, vector<16x128xf32>,
    return
  }
  func.func @transform_0(%arg0: i32) -> (i32, i32) {
    %c0_i32 = arith.constant 0 : i32
    %c0_i32_0 = arith.constant 0 : i32
    return %arg0, %c0_i32 : i32, i32
  }
  func.func @transform_1(%arg0: i32) -> (i32, i32) {
    %c0_i32 = arith.constant 0 : i32
    %c0_i32_0 = arith.constant 0 : i32
    %c0_i32_1 = arith.constant 0 : i32
    return %c0_i32, %c0_i32_0 : i32, i32
  }
  func.func @transform_2(%arg0: i32) -> (i32, i32) {
    %c0_i32 = arith.constant 0 : i32
    %c0_i32_0 = arith.constant 0 : i32
    %c0_i32_1 = arith.constant 0 : i32
    return %c0_i32, %c0_i32_0 : i32, i32
  }
  func.func @transform_3(%arg0: i32) -> (i32, i32) {
    %c0_i32 = arith.constant 0 : i32
    %c0_i32_0 = arith.constant 0 : i32
    %c0_i32_1 = arith.constant 0 : i32
    return %c0_i32, %c0_i32_0 : i32, i32
  }
  func.func @transform_4(%arg0: i32) -> (i32, i32) {
    %c0_i32 = arith.constant 0 : i32
    %c0_i32_0 = arith.constant 0 : i32
    %c0_i32_1 = arith.constant 0 : i32
    return %c0_i32, %c0_i32_0 : i32, i32
  }
  func.func @transform_5(%arg0: i32) -> (i32, i32) {
    %c0_i32 = arith.constant 0 : i32
    %c0_i32_0 = arith.constant 0 : i32
    %c0_i32_1 = arith.constant 0 : i32
    return %c0_i32, %c0_i32_0 : i32, i32
  }
  func.func @transform_6(%arg0: i32) -> (i32, i32) {
    %c0_i32 = arith.constant 0 : i32
    %c0_i32_0 = arith.constant 0 : i32
    return %arg0, %c0_i32 : i32, i32
  }
}

</mosaic_0001>

<bundles_post_ra>
// kernel: tpu_custom_call.1
= control target key start
LH: loop header
LB: loop body
LE: loop exit
PB: predicated region body
PF: predicated region fallthrough
CT: control target
= control target key end

     0   :  { %11 = vsyncpa [#allocation3], 0  ;;  %s699_s0 = inlined_call_operand.hbm [shape: f32[16,128], index: 0, kind: input, shape index: {}]   ;;  %s700_s1 = inlined_call_operand.hbm [shape: f32[128,256], index: 1, kind: input, shape index: {}]   ;;  %s701_s2 = inlined_call_operand.vmem [shape: f32[1,256], index: 2, kind: input, shape index: {}]   ;;  %s702_s3 = inlined_call_operand.hbm [shape: f32[128,128], index: 3, kind: input, shape index: {}]   ;;  %s703_s4 = inlined_call_operand.vmem [shape: f32[1,128], index: 4, kind: input, shape index: {}]   ;;  %s704_s5 = inlined_call_operand.vmem [shape: f32[1,128], index: 5, kind: input, shape index: {}]   ;;  %s705_s6 = inlined_call_operand.hbm [shape: f32[16,128], index: 6, kind: output, shape index: {}]  }
   0x1   :  { %12 = vsyncpa [#allocation6], 0 }
   0x2   :  { %13 = vsyncpa [#allocation4], 0  ;;  %s587_s21 = smov [#allocation5]   ;;  %s493_s25 = scalar_lea.hbm %s700_s1, 4096 }
   0x3   :  { %s31_s22 = sshll.u32 %s587_s21, 4  ;;  %p494_p0 = scmp.ne.s32.totalorder %s700_s1, %s493_s25  ;;  %s32_s22 = int_to_ptr.vmem [resolvable:$true] %s31_s22 }
   0x4   :  { %p497_p1 = scmp.lt.u32.totalorder %s493_s25, %s700_s1 }
   0x6   :  { %p499_p2 = pnand %p497_p1, %p494_p0 }
   0x8   :  { %502 = shalt.err (!%p499_p2)
}
   0x9   :  { %s503_s30 = scalar_lea.vmem %s32_s22, 4096  ;;  %p508_p4 = scmp.lt.s32.totalorder %s32_s22, %s32_s22 }
   0xa   :  { %p504_p3 = scmp.ne.s32.totalorder %s32_s22, %s503_s30  ;;  %p509_p5 = scmp.lt.s32.totalorder %s503_s30, %s503_s30 }
   0xc   :  { %p510_p6 = por %p509_p5, %p508_p4 }
   0xe   :  { %p511_p7 = pnand %p510_p6, %p504_p3 }
  0x10   :  { %514 = shalt.err (!%p511_p7)
}
  0x11   :  { %s588_s7 = smov 256   ;;  %s589_s8 = smov 16  }
  0x12   :  { %37 = dma.hbm_to_vmem [thread:$0]  %s700_s1, 4096, %s32_s22, [#allocation6], %s588_s7, %s588_s7, %s589_s8  }
  0x13   :  { %s590_s11 = smov [#allocation2]   ;;  %s515_s15 = scalar_lea.hbm %s699_s0, 256 }
  0x14   :  { %s19_s12 = sshll.u32 %s590_s11, 4  ;;  %p516_p8 = scmp.ne.s32.totalorder %s699_s0, %s515_s15  ;;  %s20_s12 = int_to_ptr.vmem [resolvable:$true] %s19_s12 }
  0x15   :  { %p519_p9 = scmp.lt.u32.totalorder %s515_s15, %s699_s0 }
  0x17   :  { %p521_p10 = pnand %p519_p9, %p516_p8 }
  0x19   :  { %524 = shalt.err (!%p521_p10)
}
  0x1a   :  { %s525_s20 = scalar_lea.vmem %s20_s12, 256  ;;  %p530_p12 = scmp.lt.s32.totalorder %s20_s12, %s20_s12 }
  0x1b   :  { %p526_p11 = scmp.ne.s32.totalorder %s20_s12, %s525_s20  ;;  %p531_p13 = scmp.lt.s32.totalorder %s525_s20, %s525_s20 }
  0x1d   :  { %p532_p0 = por %p531_p13, %p530_p12 }
  0x1f   :  { %p533_p1 = pnand %p532_p0, %p526_p11 }
  0x21   :  { %536 = shalt.err (!%p533_p1)
}
  0x22   :  { %s591_s1 = smov 128   ;;  %s592_s21 = smov 8  }
  0x23   :  { %25 = dma.hbm_to_vmem [thread:$0]  %s699_s0, 256, %s20_s12, [#allocation3], %s591_s1, %s591_s1, %s592_s21  }
  0x24   :  { %s593_s24 = smov [#allocation7]   ;;  %s537_s28 = scalar_lea.hbm %s702_s3, 2048 }
  0x25   :  { %s45_s25 = sshll.u32 %s593_s24, 4  ;;  %p538_p2 = scmp.ne.s32.totalorder %s702_s3, %s537_s28  ;;  %s46_s25 = int_to_ptr.vmem [resolvable:$true] %s45_s25 }
  0x26   :  { %p541_p3 = scmp.lt.u32.totalorder %s537_s28, %s702_s3 }
  0x28   :  { %p543_p4 = pnand %p541_p3, %p538_p2 }
  0x2a   :  { %546 = shalt.err (!%p543_p4)
}
  0x2b   :  { %s547_s9 = scalar_lea.vmem %s46_s25, 2048  ;;  %p552_p6 = scmp.lt.s32.totalorder %s46_s25, %s46_s25 }
  0x2c   :  { %p548_p5 = scmp.ne.s32.totalorder %s46_s25, %s547_s9  ;;  %p553_p7 = scmp.lt.s32.totalorder %s547_s9, %s547_s9 }
  0x2e   :  { %p554_p8 = por %p553_p7, %p552_p6 }
  0x30   :  { %p555_p9 = pnand %p554_p8, %p548_p5 }
  0x32   :  { %558 = shalt.err (!%p555_p9)
}
  0x33   :  { %51 = dma.hbm_to_vmem [thread:$0]  %s702_s3, 2048, %s46_s25, [#allocation6], %s591_s1, %s591_s1, %s592_s21  }
  0x34   :  { %581 = dma.done.wait [#allocation3], 256  }
  0x35   :  { %582 = vsyncadd [#allocation3], 4294967040 }
  0x36   :  { %583 = dma.done.wait [#allocation6], 6144  }
  0x37   :  { %584 = vsyncadd [#allocation6], 4294961152  ;;  %v594_v0 = vmov 0.0   ;;  %v68_v1 = vld [vmem:[#allocation5 + $0x8] sm:$0xff]  ;;  %v70_v2 = vld [vmem:[#allocation5 + $0x18] sm:$0xff] }
  0x38   :  { %175 = vmatprep.mubr.f32.mxu0 %v594_v0  ;;  %v67_v3 = vld [vmem:[#allocation5] sm:$0xff]  ;;  %v404_v4 = vpack.c.bf16 %v70_v2, %v68_v1  ;;  %v69_v5 = vld [vmem:[#allocation5 + $0x10] sm:$0xff]  ;;  %v72_v6 = vld [vmem:[#allocation5 + $0x28] sm:$0xff] }
  0x39   :  { %v74_v7 = vld [vmem:[#allocation5 + $0x38] sm:$0xff]  ;;  %v406_v8 = vpack.c.bf16 %v69_v5, %v67_v3  ;;  %v71_v10 = vld [vmem:[#allocation5 + $0x20] sm:$0xff]  ;;  %v73_v11 = vld [vmem:[#allocation5 + $0x30] sm:$0xff] }
  0x3a   :  { %v408_v9 = vpack.c.bf16 %v74_v7, %v72_v6  ;;  %v76_v12 = vld [vmem:[#allocation5 + $0x48] sm:$0xff]  ;;  %405 = vmatprep.subr.bf16.mxu0 %v404_v4  ;;  %v78_v13 = vld [vmem:[#allocation5 + $0x58] sm:$0xff]  ;;  %v410_v14 = vpack.c.bf16 %v73_v11, %v71_v10  ;;  %v75_v16 = vld [vmem:[#allocation5 + $0x40] sm:$0xff]  ;;  %v101_v11 = vlaneseq }
  0x3b   :  { %407 = vmatpush1.bf16.msra.mxu0 %v406_v8  ;;  %v412_v15 = vpack.c.bf16 %v78_v13, %v76_v12  ;;  %v77_v17 = vld [vmem:[#allocation5 + $0x50] sm:$0xff]  ;;  %v80_v18 = vld [vmem:[#allocation5 + $0x68] sm:$0xff]  ;;  %v82_v19 = vld [vmem:[#allocation5 + $0x78] sm:$0xff] }
  0x3c   :  { %409 = vmatprep.subr.bf16.mxu0 %v408_v9  ;;  %v414_v20 = vpack.c.bf16 %v77_v17, %v75_v16  ;;  %v416_v21 = vpack.c.bf16 %v82_v19, %v80_v18  ;;  %v79_v22 = vld [vmem:[#allocation5 + $0x60] sm:$0xff]  ;;  %v81_v23 = vld [vmem:[#allocation5 + $0x70] sm:$0xff]  ;;  %v84_v24 = vld [vmem:[#allocation5 + $0x88] sm:$0xff]  ;;  %v102_v12 = vshrl.u32 %v101_v11, 7 }
  0x3d   :  { %v86_v25 = vld [vmem:[#allocation5 + $0x98] sm:$0xff]  ;;  %v418_v26 = vpack.c.bf16 %v81_v23, %v79_v22  ;;  %v83_v28 = vld [vmem:[#allocation5 + $0x80] sm:$0xff]  ;;  %v85_v29 = vld [vmem:[#allocation5 + $0x90] sm:$0xff] }
  0x3e   :  { %v420_v27 = vpack.c.bf16 %v86_v25, %v84_v24  ;;  %v88_v30 = vld [vmem:[#allocation5 + $0xa8] sm:$0xff]  ;;  %v90_v31 = vld [vmem:[#allocation5 + $0xb8] sm:$0xff]  ;;  %v422_v32 = vpack.c.bf16 %v85_v29, %v83_v28  ;;  %v87_v34 = vld [vmem:[#allocation5 + $0xa0] sm:$0xff]  ;;  %v107_v13 = vsub.s32 1, %v102_v12 }
  0x3f   :  { %411 = vmatpush1.bf16.msra.mxu0 %v410_v14  ;;  %v424_v33 = vpack.c.bf16 %v90_v31, %v88_v30  ;;  %v89_v35 = vld [vmem:[#allocation5 + $0xb0] sm:$0xff]  ;;  %v92_v36 = vld [vmem:[#allocation5 + $0xc8] sm:$0xff]  ;;  %v94_v37 = vld [vmem:[#allocation5 + $0xd8] sm:$0xff] }
  0x40   :  { %413 = vmatprep.subr.bf16.mxu0 %v412_v15  ;;  %v426_v38 = vpack.c.bf16 %v89_v35, %v87_v34  ;;  %v428_v39 = vpack.c.bf16 %v94_v37, %v92_v36  ;;  %v91_v40 = vld [vmem:[#allocation5 + $0xc0] sm:$0xff]  ;;  %v93_v41 = vld [vmem:[#allocation5 + $0xd0] sm:$0xff]  ;;  %v96_v42 = vld [vmem:[#allocation5 + $0xe8] sm:$0xff] }
  0x41   :  { %v98_v43 = vld [vmem:[#allocation5 + $0xf8] sm:$0xff]  ;;  %v430_v44 = vpack.c.bf16 %v93_v41, %v91_v40  ;;  %v95_v46 = vld [vmem:[#allocation5 + $0xe0] sm:$0xff]  ;;  %v97_v47 = vld [vmem:[#allocation5 + $0xf0] sm:$0xff] }
  0x42   :  { %v432_v45 = vpack.c.bf16 %v98_v43, %v96_v42  ;;  %v434_v48 = vpack.c.bf16 %v97_v47, %v95_v46  ;;  %v65_v49 = vld [vmem:[#allocation2] sm:$0xff]  ;;  %v66_v50 = vld [vmem:[#allocation2 + $0x8] sm:$0xff]  ;;  %v202_v51 = vld [vmem:[#allocation7] sm:$0xff]  ;;  %v103_v43 = vsub.s32 0, %v102_v12 }
  0x43   :  { %415 = vmatpush1.bf16.msra.mxu0 %v414_v20  ;;  %v203_v52 = vld [vmem:[#allocation7 + $0x8] sm:$0xff]  ;;  %v204_v54 = vld [vmem:[#allocation7 + $0x10] sm:$0xff]  ;;  %v205_v55 = vld [vmem:[#allocation7 + $0x18] sm:$0xff] }
  0x44   :  { %417 = vmatprep.subr.bf16.mxu0 %v416_v21  ;;  %v436_v53 = vpack.c.bf16 %v203_v52, %v202_v51  ;;  %v440_v56 = vpack.c.bf16 %v205_v55, %v204_v54  ;;  %v206_v57 = vld [vmem:[#allocation7 + $0x20] sm:$0xff]  ;;  %v207_v58 = vld [vmem:[#allocation7 + $0x28] sm:$0xff]  ;;  %v208_v60 = vld [vmem:[#allocation7 + $0x30] sm:$0xff] }
  0x45   :  { %v444_v59 = vpack.c.bf16 %v207_v58, %v206_v57  ;;  %v209_v61 = vld [vmem:[#allocation7 + $0x38] sm:$0xff]  ;;  %v210_v63 = vld [vmem:[#allocation7 + $0x40] sm:$0xff]  ;;  %v212_v2 = vld [vmem:[#allocation7 + $0x50] sm:$0xff] }
  0x46   :  { %437 = vmatprep.subr.bf16.mxu1 %v436_v53  ;;  %v448_v62 = vpack.c.bf16 %v209_v61, %v208_v60  ;;  %v213_v3 = vld [vmem:[#allocation7 + $0x58] sm:$0xff]  ;;  %v214_v5 = vld [vmem:[#allocation7 + $0x60] sm:$0xff]  ;;  %v215_v6 = vld [vmem:[#allocation7 + $0x68] sm:$0xff] }
  0x47   :  { %419 = vmatpush1.bf16.msra.mxu0 %v418_v26  ;;  %439 = vmatpush3.bf16.msra.mxu1 %v436_v53  ;;  %v456_v4 = vpack.c.bf16 %v213_v3, %v212_v2  ;;  %v460_v7 = vpack.c.bf16 %v215_v6, %v214_v5  ;;  %v216_v8 = vld [vmem:[#allocation7 + $0x70] sm:$0xff]  ;;  %v217_v9 = vld [vmem:[#allocation7 + $0x78] sm:$0xff] }
  0x48   :  { %421 = vmatprep.subr.bf16.mxu0 %v420_v27  ;;  %441 = vmatprep.subr.bf16.mxu1 %v440_v56  ;;  %v464_v10 = vpack.c.bf16 %v217_v9, %v216_v8  ;;  %v99_v14 = vld [vmem:[%s701_s2] sm:$0x3] }
  0x49   :  { %v108_v15 = vrot.slane %v99_v14, %v107_v13  ;;  %v350_v46 = vld [vmem:[%s704_s5] ss:$0 sm:$0xff] }
  0x4b   :  { %423 = vmatpush1.bf16.msra.mxu0 %v422_v32  ;;  %443 = vmatpush3.bf16.msra.mxu1 %v440_v56  ;;  %v347_v32 = vld [vmem:[%s703_s4] ss:$0 sm:$0xff]  ;;  %s595_s4 = smov [#allocation8]  }
  0x4c   :  { %425 = vmatprep.subr.bf16.mxu0 %v424_v33  ;;  %445 = vmatprep.subr.bf16.mxu1 %v444_v59  ;;  %s332_s15 = sshll.u32 %s595_s4, 4  ;;  %s333_s15 = int_to_ptr.vmem [resolvable:$true] %s332_s15 }
  0x4d   :  { %s559_s16 = scalar_lea.vmem %s333_s15, 256  ;;  %p564_p11 = scmp.lt.s32.totalorder %s333_s15, %s333_s15 }
  0x4e   :  { %p560_p10 = scmp.ne.s32.totalorder %s333_s15, %s559_s16  ;;  %p565_p12 = scmp.lt.s32.totalorder %s559_s16, %s559_s16 }
  0x4f   :  { %427 = vmatpush1.bf16.msra.mxu0 %v426_v38  ;;  %447 = vmatpush3.bf16.msra.mxu1 %v444_v59 }
  0x50   :  { %429 = vmatprep.subr.bf16.mxu0 %v428_v39  ;;  %449 = vmatprep.subr.bf16.mxu1 %v448_v62  ;;  %p566_p13 = por %p565_p12, %p564_p11 }
  0x52   :  { %p567_p0 = pnand %p566_p13, %p560_p10 }
  0x53   :  { %431 = vmatpush1.bf16.msra.mxu0 %v430_v44  ;;  %451 = vmatpush3.bf16.msra.mxu1 %v448_v62 }
  0x54   :  { %433 = vmatprep.subr.bf16.mxu0 %v432_v45  ;;  %v104_v45 = vrot.slane %v99_v14, %v103_v43 }
  0x57   :  { %435 = vmatpush1.bf16.msra.mxu0 %v434_v48 }
  0x5a   :  { %176 = vmatmul.mubr.f32.vlgmr.msra.gmra.mrb[0].mxu0 %v65_v49 }
  0x5b   :  { %181 = vmatprep.mubr.f32.mxu0 %v594_v0  ;;  %v211_v0 = vld [vmem:[#allocation7 + $0x48] sm:$0xff] }
  0x5c   :  { %v452_v1 = vpack.c.bf16 %v211_v0, %v210_v63 }
  0x5e   :  { %182 = vmatmul.mubr.f32.gmra.mrb[2].mxu0 %v66_v50  ;;  %453 = vmatprep.subr.bf16.mxu1 %v452_v1 }
  0x5f   :  { %455 = vmatpush3.bf16.msra.mxu1 %v452_v1 }
  0x60   :  { %457 = vmatprep.subr.bf16.mxu1 %v456_v4 }
  0x63   :  { %459 = vmatpush3.bf16.msra.mxu1 %v456_v4 }
  0x64   :  { %461 = vmatprep.subr.bf16.mxu1 %v460_v7 }
  0x67   :  { %463 = vmatpush3.bf16.msra.mxu1 %v460_v7 }
  0x68   :  { %465 = vmatprep.subr.bf16.mxu1 %v464_v10 }
  0x6b   :  { %467 = vmatpush3.bf16.msra.mxu1 %v464_v10 }
 0x12d   :  { %v177_v16 = vpop.f32.mrb[0].mxu0 }
 0x12e   :  { %v179_v17 = vpop.f32.mrb[1].mxu0  ;;  %v178_v52 = vadd.f32 %v177_v16, %v104_v45 }
 0x12f   :  { %v180_v18 = vadd.f32 %v179_v17, %v108_v15 }
 0x131   :  { %v345_v19 = vmul.f32 -1.442695, %v180_v18  ;;  %v183_v20 = vpop.f32.mrb[2].mxu0 }
 0x132   :  { %v185_v21 = vpop.f32.mrb[3].mxu0  ;;  %v184_v50 = vadd.f32 %v183_v20, %v104_v45 }
 0x133   :  { %477 = vpow2.f32 %v345_v19  ;;  %v186_v22 = vadd.f32 %v185_v21, %v108_v15 }
 0x135   :  { %v346_v23 = vmul.f32 -1.442695, %v186_v22 }
 0x137   :  { %479 = vpow2.f32 %v346_v23 }
 0x13d   :  { %v478_v24 = vpop.eup %477 }
 0x13e   :  { %v194_v25 = vadd.f32 1.0, %v478_v24 }
 0x140   :  { %481 = vrcp.f32 %v194_v25 }
 0x141   :  { %v480_v26 = vpop.eup %479 }
 0x142   :  { %v195_v27 = vadd.f32 1.0, %v480_v26 }
 0x144   :  { %483 = vrcp.f32 %v195_v27 }
 0x14a   :  { %v482_v28 = vpop.eup %481 }
 0x14b   :  { %v200_v29 = vmul.f32 %v482_v28, %v180_v18 }
 0x14d   :  { %401 = vmatprep.mubr.f32.mxu1 %v200_v29 }
 0x14e   :  { %v484_v30 = vpop.eup %483 }
 0x14f   :  { %v201_v31 = vmul.f32 %v484_v30, %v186_v22 }
 0x151   :  { %402 = vmatmul.mubr.f32.vlgmr.msra.gmra.mrb[0].mxu1 %v201_v31 }
 0x224   :  { %v403_v33 = vpop.f32.mrb[0].mxu1 }
 0x225   :  { %v297_v34 = vadd.f32 %v403_v33, %v347_v32  ;;  %v291_v35 = vpop.f32.mrb[1].mxu1 }
 0x226   :  { %v292_v36 = vadd.f32 %v347_v32, %v291_v35 }
 0x227   :  { %v349_v37 = vmul.f32 -1.442695, %v297_v34 }
 0x228   :  { %v348_v38 = vmul.f32 -1.442695, %v292_v36 }
 0x229   :  { %485 = vpow2.f32 %v349_v37 }
 0x22a   :  { %487 = vpow2.f32 %v348_v38 }
 0x233   :  { %v486_v39 = vpop.eup %485 }
 0x234   :  { %v488_v40 = vpop.eup %487  ;;  %v307_v41 = vadd.f32 1.0, %v486_v39 }
 0x235   :  { %v306_v42 = vadd.f32 1.0, %v488_v40 }
 0x236   :  { %489 = vrcp.f32 %v307_v41 }
 0x237   :  { %491 = vrcp.f32 %v306_v42 }
 0x240   :  { %v490_v44 = vpop.eup %489 }
 0x241   :  { %v492_v47 = vpop.eup %491  ;;  %v313_v48 = vmul.f32 %v490_v44, %v297_v34 }
 0x242   :  { %v312_v49 = vmul.f32 %v492_v47, %v292_v36 }
 0x243   :  { %v322_v51 = vmul.f32 %v350_v46, %v313_v48 }
 0x244   :  { %v321_v53 = vmul.f32 %v350_v46, %v312_v49 }
 0x245   :  { %v324_v54 = vadd.f32 %v322_v51, %v184_v50 }
 0x246   :  { %v323_v55 = vadd.f32 %v321_v53, %v178_v52 }
 0x247   :  { %326 = vst [vmem:[#allocation8 + $0x8] sm:$0xff] %v324_v54 }
 0x248   :  { %325 = vst [vmem:[#allocation8] sm:$0xff] %v323_v55 }
 0x249   :  { %570 = shalt.err (!%p567_p0)
}
 0x24a   :  { %s571_s18 = scalar_lea.hbm %s705_s6, 256 }
 0x24b   :  { %p572_p1 = scmp.ne.s32.totalorder %s705_s6, %s571_s18  ;;  %p575_p2 = scmp.lt.u32.totalorder %s571_s18, %s705_s6 }
 0x24d   :  { %p577_p3 = pnand %p575_p2, %p572_p1 }
 0x24f   :  { %580 = shalt.err (!%p577_p3)
}
 0x250   :  { %338 = dma.vmem_to_hbm [thread:$0]  %s333_s15, 256, %s705_s6, [#allocation4], %s591_s1, %s591_s1, %s592_s21  }
 0x251   :  { %585 = dma.done.wait [#allocation4], 256  }
 0x252   :  { %586 = vsyncadd [#allocation4], 4294967040 }
 0x253   :  { %342 = vsyncpa [#allocation3], 1 }
 0x254   :  { %343 = vsyncpa [#allocation6], 1 }
 0x255   :  { %344 = vsyncpa [#allocation4], 1 }

</bundles_post_ra>
